<compile_context>
chip_gen: v7x
topology: tpu7x:2x2x1
jax: 0.10.0
libtpu: 0.0.40
codegen_flags: <defaults>
</compile_context>

<pallas_src>
import functools
import math

import jax
import jax.numpy as jnp
from jax.experimental import pallas as pl
from jax.experimental.pallas import tpu as pltpu


def _gelu_tanh(x):
    # TODO(synk): PyTorch F.gelu defaults to exact erf-GELU; the tanh
    # approximation is used here (erf lowering in Mosaic is not guaranteed),
    # max deviation ~1e-3.  The in-script reference uses the same formula.
    c = 0.7978845608028654  # sqrt(2/pi)
    return 0.5 * x * (1.0 + jnp.tanh(c * (x + 0.044715 * x * x * x)))


def _layernorm(x, gamma, beta, eps=1e-5):
    x = x.astype(jnp.float32)
    mu = jnp.mean(x, axis=-1, keepdims=True)
    xc = x - mu
    var = jnp.mean(xc * xc, axis=-1, keepdims=True)
    return xc * jax.lax.rsqrt(var + eps) * gamma + beta


# --------------------------------------------------------------------------
# Kernel 1: full-sequence K/V projection, heads-major, one grid step per batch
# row.  Hoisted out of the per-query-tile loop so the fused kernel carries no
# state across grid steps.
# --------------------------------------------------------------------------
def _kv_proj_kernel(x_ref, wk_ref, bk_ref, wv_ref, bv_ref, k_ref, v_ref, *,
                    num_heads):
    T, C = x_ref.shape[1], x_ref.shape[2]
    hd = C // num_heads
    cdt = wk_ref.dtype                            # MXU operand dtype
    xf = x_ref[0].astype(cdt)                     # (T, C)
    k = jnp.dot(xf, wk_ref[...], preferred_element_type=jnp.float32) + bk_ref[...]
    v = jnp.dot(xf, wv_ref[...], preferred_element_type=jnp.float32) + bv_ref[...]
    # (T, C) -> (NH, T, hd); head h owns columns [h*hd, (h+1)*hd)
    k_ref[0] = jnp.transpose(k.reshape(T, num_heads, hd), (1, 0, 2)).astype(k_ref.dtype)
    v_ref[0] = jnp.transpose(v.reshape(T, num_heads, hd), (1, 0, 2)).astype(v_ref.dtype)


# --------------------------------------------------------------------------
# Kernel 2: fused attention + MLP for one (batch row, query tile) grid point.
# No scratch / no cross-step dependencies -> both grid axes are "parallel".
# --------------------------------------------------------------------------
def _block_kernel(xq_ref, bias_ref, k_ref, v_ref,
                  wq_ref, bq_ref, wo_ref, bo_ref, g1_ref, b1_ref,
                  wi_ref, bi_ref, wd_ref, bd_ref, g2_ref, b2_ref,
                  o_ref, *, num_heads):
    nh = num_heads
    tq, C = xq_ref.shape[1], xq_ref.shape[2]
    hd = C // nh
    cdt = wq_ref.dtype                            # MXU operand dtype (bf16 or f32)

    xq = xq_ref[0]                                # (tq, C), input dtype

    # Q projection; fold 1/sqrt(hd) into q (nh*tq*hd elements) instead of
    # scaling the full (nh, tq, T) score tensor.
    q = jnp.dot(xq.astype(cdt), wq_ref[...],
                preferred_element_type=jnp.float32) + bq_ref[...]
    q = q * jnp.float32(1.0 / math.sqrt(hd))
    q3 = jnp.transpose(q.reshape(tq, nh, hd), (1, 0, 2)).astype(cdt)   # (nh, tq, hd)

    k3 = k_ref[0]                                 # (nh, T, hd)
    v3 = v_ref[0]                                 # (nh, T, hd)

    # TODO(synk): for T >= ~1024 block the key axis flash-style (online max/sum)
    # instead of materializing the full (nh, tq, T) f32 score tensor.
    s = jnp.einsum('hqd,hkd->hqk', q3, k3,
                   preferred_element_type=jnp.float32)                 # (nh, tq, T)
    # Additive key-padding bias, precomputed in the wrapper.  Finite -1e30 (not
    # -inf) so fully-masked rows give uniform attention instead of NaN — a
    # deliberate, documented divergence from the -inf reference semantics.
    s = s + bias_ref[0]                           # (1, T) broadcast over heads/rows

    s_max = jnp.max(s, axis=-1, keepdims=True)
    p = jnp.exp(s - s_max)
    denom = jnp.sum(p, axis=-1, keepdims=True)
    p = p * (1.0 / denom)                         # exact; denom is only (nh, tq, 1)
    ctx = jnp.einsum('hqk,hkd->hqd', p.astype(cdt), v3,
                     preferred_element_type=jnp.float32)               # (nh, tq, hd)

    attn = jnp.transpose(ctx, (1, 0, 2)).reshape(tq, C)                # merge heads

    # Attention output dense + LayerNorm (no residual inside the LN, matching the
    # reference MultiHeadAttention), then residual add in f32.
    proj = jnp.dot(attn.astype(cdt), wo_ref[...],
                   preferred_element_type=jnp.float32) + bo_ref[...]
    h = xq.astype(jnp.float32) + _layernorm(proj, g1_ref[...], b1_ref[...])

    # MLP: dense C->4C, GELU, dense 4C->C, LayerNorm, residual.
    hi = jnp.dot(h.astype(cdt), wi_ref[...],
                 preferred_element_type=jnp.float32) + bi_ref[...]
    hi = _gelu_tanh(hi)
    hm = jnp.dot(hi.astype(cdt), wd_ref[...],
                 preferred_element_type=jnp.float32) + bd_ref[...]
    m = _layernorm(hm, g2_ref[...], b2_ref[...])

    o_ref[0] = (h + m).astype(o_ref.dtype)


def bert_block(x, attn_mask, params, num_heads, *, q_block=None,
               compute_dtype=None, vmem_limit_bytes=56 * 1024 * 1024):
    """Fused BERT Block forward.  x: (B,T,C) ; attn_mask: (B,T) int (1=attend)."""
    B, T, C = x.shape
    (wq, bq, wk, bk, wv, bv, wo, bo, g1, be1,
     wi, bi, wd, bd, g2, be2) = params
    H = wi.shape[1]                               # 4*C
    assert C % num_heads == 0
    hd = C // num_heads

    if q_block is None:
        # Bigger tiles amortize per-step overhead; 256 is comfortable on
        # v5e/v6e (128 MiB VMEM) and still fits v7x (64 MiB) at BERT scale.
        q_block = min(T, 256)
    assert T % q_block == 0
    n_q = T // q_block

    cdt = jnp.dtype(compute_dtype) if compute_dtype is not None else x.dtype
    wqc, wkc, wvc, woc, wic, wdc = (w.astype(cdt) for w in (wq, wk, wv, wo, wi, wd))

    row_f32 = lambda v: v.reshape(1, -1).astype(jnp.float32)
    bq2, bk2, bv2, bo2 = map(row_f32, (bq, bk, bv, bo))
    bi2, bd2 = row_f32(bi), row_f32(bd)
    g1r, b1r, g2r, b2r = map(row_f32, (g1, be1, g2, be2))

    # Additive key-padding bias built once per batch row (not per tile / head).
    mask_bias = jnp.where(attn_mask == 0, jnp.float32(-1e30),
                          jnp.float32(0.0)).reshape(B, 1, T)

    # ---- Kernel 1: full-sequence K/V projection (heads-major) ----
    inv1 = lambda shape: pl.BlockSpec(shape, lambda b: (0,) * len(shape),
                                      pipeline_mode=pl.Buffered(1))
    k_heads, v_heads = pl.pallas_call(
        functools.partial(_kv_proj_kernel, num_heads=num_heads),
        out_shape=(jax.ShapeDtypeStruct((B, num_heads, T, hd), cdt),
                   jax.ShapeDtypeStruct((B, num_heads, T, hd), cdt)),
        grid_spec=pltpu.PrefetchScalarGridSpec(
            num_scalar_prefetch=0,
            grid=(B,),
            in_specs=[
                pl.BlockSpec((1, T, C), lambda b: (b, 0, 0)),
                inv1((C, C)), inv1((1, C)),            # Wk, bk
                inv1((C, C)), inv1((1, C)),            # Wv, bv
            ],
            out_specs=[
                pl.BlockSpec((1, num_heads, T, hd), lambda b: (b, 0, 0, 0)),
                pl.BlockSpec((1, num_heads, T, hd), lambda b: (b, 0, 0, 0)),
            ],
        ),
        compiler_params=pltpu.CompilerParams(
            dimension_semantics=("parallel",),
            vmem_limit_bytes=vmem_limit_bytes,
        ),
    )(x, wkc, bk2, wvc, bv2)

    # ---- Kernel 2: fused attention + MLP over (batch, query-tile) grid ----
    inv2 = lambda shape: pl.BlockSpec(shape, lambda b, qi: (0,) * len(shape),
                                      pipeline_mode=pl.Buffered(1))
    return pl.pallas_call(
        functools.partial(_block_kernel, num_heads=num_heads),
        out_shape=jax.ShapeDtypeStruct((B, T, C), x.dtype),
        grid_spec=pltpu.PrefetchScalarGridSpec(
            num_scalar_prefetch=0,
            grid=(B, n_q),
            in_specs=[
                pl.BlockSpec((1, q_block, C), lambda b, qi: (b, qi, 0)),          # x tile
                pl.BlockSpec((1, 1, T), lambda b, qi: (b, 0, 0)),                 # mask bias
                pl.BlockSpec((1, num_heads, T, hd), lambda b, qi: (b, 0, 0, 0)),  # K
                pl.BlockSpec((1, num_heads, T, hd), lambda b, qi: (b, 0, 0, 0)),  # V
                inv2((C, C)), inv2((1, C)),            # Wq, bq
                inv2((C, C)), inv2((1, C)),            # Wo, bo
                inv2((1, C)), inv2((1, C)),            # LN1 gamma, beta
                inv2((C, H)), inv2((1, H)),            # Wi, bi   (C -> 4C)
                inv2((H, C)), inv2((1, C)),            # Wd, bd   (4C -> C)
                inv2((1, C)), inv2((1, C)),            # LN2 gamma, beta
            ],
            out_specs=pl.BlockSpec((1, q_block, C), lambda b, qi: (b, qi, 0)),
        ),
        compiler_params=pltpu.CompilerParams(
            dimension_semantics=("parallel", "parallel"),
            vmem_limit_bytes=vmem_limit_bytes,
        ),
    )(x, mask_bias, k_heads, v_heads, wqc, bq2, woc, bo2, g1r, b1r,
      wic, bi2, wdc, bd2, g2r, b2r)


def reference_block(x, attn_mask, params, num_heads):
    """Pure-JAX reference mirroring the PyTorch Block semantics."""
    (wq, bq, wk, bk, wv, bv, wo, bo, g1, be1,
     wi, bi, wd, bd, g2, be2) = params
    B, T, C = x.shape
    hd = C // num_heads

    def proj(w, b):
        return (x @ w + b).reshape(B, T, num_heads, hd).transpose(0, 2, 1, 3)

    q, k, v = proj(wq, bq), proj(wk, bk), proj(wv, bv)
    wei = jnp.einsum("bhtd,bhsd->bhts", q, k) * (1.0 / math.sqrt(hd))
    wei = jnp.where(attn_mask[:, None, None, :] == 0, -jnp.inf, wei)
    wei = jax.nn.softmax(wei, axis=-1)
    attn = jnp.einsum("bhts,bhsd->bhtd", wei, v)
    attn = attn.transpose(0, 2, 1, 3).reshape(B, T, C)
    attn = _layernorm(attn @ wo + bo, g1, be1)
    h = x + attn
    m = _gelu_tanh(h @ wi + bi)
    m = _layernorm(m @ wd + bd, g2, be2)
    return h + m


if __name__ == "__main__":
    B, T, C, NH = 2, 16, 32, 4
    H = 4 * C

    key = jax.random.PRNGKey(0)
    ks = jax.random.split(key, 17)

    def lin_init(kw, fan_in, shape):
        bound = 1.0 / math.sqrt(fan_in)
        return jax.random.uniform(kw, shape, jnp.float32, -bound, bound)

    x = jax.random.normal(ks[0], (B, T, C), jnp.float32)
    # second sequence has its last three key positions masked out
    attn_mask = jnp.stack([
        jnp.ones((T,), jnp.int32),
        jnp.concatenate([jnp.ones((T - 3,), jnp.int32), jnp.zeros((3,), jnp.int32)]),
    ], axis=0)

    params = (
        lin_init(ks[1], C, (C, C)), lin_init(ks[2], C, (C,)),            # query
        lin_init(ks[3], C, (C, C)), lin_init(ks[4], C, (C,)),            # key
        lin_init(ks[5], C, (C, C)), lin_init(ks[6], C, (C,)),            # value
        lin_init(ks[7], C, (C, C)), lin_init(ks[8], C, (C,)),            # attn output dense
        1.0 + 0.1 * jax.random.normal(ks[9], (C,), jnp.float32),         # LN1 gamma
        0.1 * jax.random.normal(ks[10], (C,), jnp.float32),              # LN1 beta
        lin_init(ks[11], C, (C, H)), lin_init(ks[12], C, (H,)),          # intermediate dense
        lin_init(ks[13], H, (H, C)), lin_init(ks[14], H, (C,)),          # MLP output dense
        1.0 + 0.1 * jax.random.normal(ks[15], (C,), jnp.float32),        # LN2 gamma
        0.1 * jax.random.normal(ks[16], (C,), jnp.float32),              # LN2 beta
    )

    out = bert_block(x, attn_mask, params, NH, q_block=8)   # main grid (B=2, T//8=2)
    out = jax.block_until_ready(out)

    ref = reference_block(x, attn_mask, params, NH)
    assert out.shape == (B, T, C)
    max_err = float(jnp.max(jnp.abs(out - ref)))
    assert jnp.allclose(out, ref, atol=2e-3, rtol=2e-3), (
        f"mismatch vs reference (max abs err {max_err})")

    print("KERNEL_OK")
</pallas_src>

<mosaic_0001>
module attributes {stable_mosaic.version = 11 : i64} {
  func.func @_kv_proj_kernel(%arg0: i32, %arg1: memref<1x16x32xf32, #tpu.memory_space<vmem>>, %arg2: memref<32x32xf32, #tpu.memory_space<vmem>>, %arg3: memref<1x32xf32, #tpu.memory_space<vmem>>, %arg4: memref<32x32xf32, #tpu.memory_space<vmem>>, %arg5: memref<1x32xf32, #tpu.memory_space<vmem>>, %arg6: memref<1x4x16x8xf32, #tpu.memory_space<vmem>>, %arg7: memref<1x4x16x8xf32, #tpu.memory_space<vmem>>) attributes {dimension_semantics = [#tpu.dimension_semantics<parallel>], iteration_bounds = array<i64: 2>, scalar_prefetch = 0 : i64, scratch_operands = 0 : i64, tpu.core_type = #tpu.core_type<tc>, window_params = [{transform_indices = @transform_0, window_bounds = array<i64: 1, 16, 32>}, {pipeline_mode = #tpu.pipeline_mode<synchronous>, transform_indices = @transform_1, window_bounds = array<i64: 32, 32>}, {pipeline_mode = #tpu.pipeline_mode<synchronous>, transform_indices = @transform_2, window_bounds = array<i64: 1, 32>}, {pipeline_mode = #tpu.pipeline_mode<synchronous>, transform_indices = @transform_3, window_bounds = array<i64: 32, 32>}, {pipeline_mode = #tpu.pipeline_mode<synchronous>, transform_indices = @transform_4, window_bounds = array<i64: 1, 32>}, {transform_indices = @transform_5, window_bounds = array<i64: 1, 4, 16, 8>}, {transform_indices = @transform_6, window_bounds = array<i64: 1, 4, 16, 8>}]} {
    %c0 = arith.constant 0 : index
    %c0_0 = arith.constant 0 : index
    %c0_1 = arith.constant 0 : index
    %0 = vector.load %arg1[%c0, %c0_0, %c0_1] : memref<1x16x32xf32, #tpu.memory_space<vmem>>, vector<1x16x32xf32>
    %1 = vector.shape_cast %0 : vector<1x16x32xf32> to vector<16x32xf32>
    %c0_2 = arith.constant 0 : index
    %c0_3 = arith.constant 0 : index
    %2 = vector.load %arg2[%c0_2, %c0_3] : memref<32x32xf32, #tpu.memory_space<vmem>>, vector<32x32xf32>
    %cst = arith.constant dense<0.000000e+00> : vector<16x32xf32>
    %3 = tpu.matmul %1, %2, %cst {dimension_numbers = #tpu.dot_dimension_numbers<[1], [0], [0], [1], [0, 0, 1, 1], [], []>} : vector<16x32xf32>, vector<32x32xf32>, vector<16x32xf32> -> vector<16x32xf32>
    %c0_4 = arith.constant 0 : index
    %c0_5 = arith.constant 0 : index
    %4 = vector.load %arg3[%c0_4, %c0_5] : memref<1x32xf32, #tpu.memory_space<vmem>>, vector<1x32xf32>
    %5 = vector.broadcast %4 : vector<1x32xf32> to vector<16x32xf32>
    %6 = arith.addf %3, %5 : vector<16x32xf32>
    %c0_6 = arith.constant 0 : index
    %c0_7 = arith.constant 0 : index
    %7 = vector.load %arg4[%c0_6, %c0_7] : memref<32x32xf32, #tpu.memory_space<vmem>>, vector<32x32xf32>
    %cst_8 = arith.constant dense<0.000000e+00> : vector<16x32xf32>
    %8 = tpu.matmul %1, %7, %cst_8 {dimension_numbers = #tpu.dot_dimension_numbers<[1], [0], [0], [1], [0, 0, 1, 1], [], []>} : vector<16x32xf32>, vector<32x32xf32>, vector<16x32xf32> -> vector<16x32xf32>
    %c0_9 = arith.constant 0 : index
    %c0_10 = arith.constant 0 : index
    %9 = vector.load %arg5[%c0_9, %c0_10] : memref<1x32xf32, #tpu.memory_space<vmem>>, vector<1x32xf32>
    %10 = vector.broadcast %9 : vector<1x32xf32> to vector<16x32xf32>
    %11 = arith.addf %8, %10 : vector<16x32xf32>
    %12 = vector.shape_cast %6 : vector<16x32xf32> to vector<16x4x8xf32>
    %13 = tpu.transpose %12, [1, 0, 2] : vector<16x4x8xf32> -> vector<4x16x8xf32>
    %c0_11 = arith.constant 0 : index
    %c0_12 = arith.constant 0 : index
    %c0_13 = arith.constant 0 : index
    %c0_14 = arith.constant 0 : index
    %14 = vector.load %arg6[%c0_11, %c0_12, %c0_13, %c0_14] : memref<1x4x16x8xf32, #tpu.memory_space<vmem>>, vector<1x4x16x8xf32>
    %15 = vector.shape_cast %14 : vector<1x4x16x8xf32> to vector<4x16x8xf32>
    %16 = vector.shape_cast %13 : vector<4x16x8xf32> to vector<1x4x16x8xf32>
    tpu.vector_store %arg6[%c0_11, %c0_12, %c0_13, %c0_14], %16 {strides = array<i32>} : memref<1x4x16x8xf32, #tpu.memory_space<vmem>>, vector<1x4x16x8xf32>,
    %17 = vector.shape_cast %11 : vector<16x32xf32> to vector<16x4x8xf32>
    %18 = tpu.transpose %17, [1, 0, 2] : vector<16x4x8xf32> -> vector<4x16x8xf32>
    %c0_15 = arith.constant 0 : index
    %c0_16 = arith.constant 0 : index
    %c0_17 = arith.constant 0 : index
    %c0_18 = arith.constant 0 : index
    %19 = vector.load %arg7[%c0_15, %c0_16, %c0_17, %c0_18] : memref<1x4x16x8xf32, #tpu.memory_space<vmem>>, vector<1x4x16x8xf32>
    %20 = vector.shape_cast %19 : vector<1x4x16x8xf32> to vector<4x16x8xf32>
    %21 = vector.shape_cast %18 : vector<4x16x8xf32> to vector<1x4x16x8xf32>
    tpu.vector_store %arg7[%c0_15, %c0_16, %c0_17, %c0_18], %21 {strides = array<i32>} : memref<1x4x16x8xf32, #tpu.memory_space<vmem>>, vector<1x4x16x8xf32>,
    return
  }
  func.func @transform_0(%arg0: i32) -> (i32, i32, i32) {
    %c0_i32 = arith.constant 0 : i32
    %c0_i32_0 = arith.constant 0 : i32
    %c0_i32_1 = arith.constant 0 : i32
    return %arg0, %c0_i32, %c0_i32_0 : i32, i32, i32
  }
  func.func @transform_1(%arg0: i32) -> (i32, i32) {
    %c0_i32 = arith.constant 0 : i32
    %c0_i32_0 = arith.constant 0 : i32
    %c0_i32_1 = arith.constant 0 : i32
    return %c0_i32, %c0_i32_0 : i32, i32
  }
  func.func @transform_2(%arg0: i32) -> (i32, i32) {
    %c0_i32 = arith.constant 0 : i32
    %c0_i32_0 = arith.constant 0 : i32
    %c0_i32_1 = arith.constant 0 : i32
    return %c0_i32, %c0_i32_0 : i32, i32
  }
  func.func @transform_3(%arg0: i32) -> (i32, i32) {
    %c0_i32 = arith.constant 0 : i32
    %c0_i32_0 = arith.constant 0 : i32
    %c0_i32_1 = arith.constant 0 : i32
    return %c0_i32, %c0_i32_0 : i32, i32
  }
  func.func @transform_4(%arg0: i32) -> (i32, i32) {
    %c0_i32 = arith.constant 0 : i32
    %c0_i32_0 = arith.constant 0 : i32
    %c0_i32_1 = arith.constant 0 : i32
    return %c0_i32, %c0_i32_0 : i32, i32
  }
  func.func @transform_5(%arg0: i32) -> (i32, i32, i32, i32) {
    %c0_i32 = arith.constant 0 : i32
    %c0_i32_0 = arith.constant 0 : i32
    %c0_i32_1 = arith.constant 0 : i32
    %c0_i32_2 = arith.constant 0 : i32
    return %arg0, %c0_i32, %c0_i32_0, %c0_i32_1 : i32, i32, i32, i32
  }
  func.func @transform_6(%arg0: i32) -> (i32, i32, i32, i32) {
    %c0_i32 = arith.constant 0 : i32
    %c0_i32_0 = arith.constant 0 : i32
    %c0_i32_1 = arith.constant 0 : i32
    %c0_i32_2 = arith.constant 0 : i32
    return %arg0, %c0_i32, %c0_i32_0, %c0_i32_1 : i32, i32, i32, i32
  }
}

</mosaic_0001>

<bundles_post_ra>
// kernel: tpu_custom_call.1
= control target key start
LH: loop header
LB: loop body
LE: loop exit
PB: predicated region body
PF: predicated region fallthrough
CT: control target
= control target key end

     0   :  { %12 = vsyncpa [#allocation3], 0  ;;  %s1890_s0 = inlined_call_operand.hbm [shape: f32[2,16,32], index: 0, kind: input, shape index: {}]   ;;  %s1891_s1 = inlined_call_operand.hbm [shape: f32[32,32], index: 1, kind: input, shape index: {}]   ;;  %s1892_s2 = inlined_call_operand.vmem [shape: f32[1,32], index: 2, kind: input, shape index: {}]   ;;  %s1893_s3 = inlined_call_operand.hbm [shape: f32[32,32], index: 3, kind: input, shape index: {}]   ;;  %s1894_s4 = inlined_call_operand.vmem [shape: f32[1,32], index: 4, kind: input, shape index: {}]   ;;  %s1895_s5 = inlined_call_operand.vmem [shape: f32[2,4,16,8], index: 5, kind: output, shape index: {0}]   ;;  %s1896_s6 = inlined_call_operand.vmem [shape: f32[2,4,16,8], index: 6, kind: output, shape index: {1}]  }
   0x1   :  { %14 = vsyncpa [#allocation3 + $0x1], 0 }
   0x2   :  { %15 = vsyncpa [#allocation5], 0  ;;  %s1538_s21 = smov 0   ;;  %s1540_s22 = smov 0  }
   0x3   :  { %s1542_s23 = smov 0   ;;  %s1544_s24 = smov 0  }
   0x4 LB: > { %s1557_s25 = sadd.s32 4294967295, %s1491_s24   ;;  %p41_p0 = scmp.ne.s32.totalorder %s1483_s22, %s1479_s21  ;;  %s1491_s24 = sphi %s1544_s24, %s1911_s24   ;;  %s1487_s23 = sphi %s1542_s23, %s1910_s23   ;;  %s1483_s22 = sphi %s1540_s22, %s1909_s22   ;;  %s1479_s21 = sphi %s1538_s21, %s1908_s21  }
   0x5   : > { %p1897_p1 = scmp.eq.s32.totalorder %s1557_s25, 0  ;;  %p1216_p2 = scmp.ge.s32.totalorder %s1491_s24, 1 }
   0x6   : > { %p188_p3 = scmp.lt.s32.totalorder %s1491_s24, 3  ;;  %s1493_s28 = smov [#allocation4]  }
   0x7   : > { %p1565_p4 = por %p1897_p1, %p41_p0  ;;  %s200_s29 = sshll.u32 %s1493_s28, 4  ;;  %s201_s29 = int_to_ptr.vmem [resolvable:$true] %s200_s29 }
   0x8   : > { %p1569_p5 = pnand %p1216_p2, %p188_p3  ;;  %s1494_s7 = smov [#allocation6]  }
   0x9   : > { %s1900_s26 = scalar_select %p1565_p4, 1, 0 }
   0xa   : > { %s1901_s27 = scalar_select %p1569_p5, 1, 0 }
   0xb   : > { %p1310_p6 = pneg %p1569_p5  ;;  %s216_s8 = sshll.u32 %s1494_s7, 4  ;;  %s1581_s8 = int_to_ptr.vmem [resolvable:$true] %s216_s8 }
   0xc   : > { %s1367_s11 = scalar_lea.hbm %s1891_s1, 512 }
   0xd   : > { %p1577_p7 = pnand %p1310_p6, %p1897_p1  ;;  %p1368_p8 = scmp.ne.s32.totalorder %s1891_s1, %s1367_s11 }
   0xe   : > { %p1374_p12 = scmp.lt.u32.totalorder %s1367_s11, %s1891_s1 }
   0xf   : > { %p1369_p9 = pneg %p1577_p7 }
  0x11   : > { %p1370_p10 = pnand %p1369_p9, %p1368_p8 }
  0x13   : > { %p1371_p11 = pneg %p1370_p10 }
  0x15   : > { %p1376_p13 = pnand %p1374_p12, %p1371_p11 }
  0x17   : > { %1379 = shalt.err (!%p1376_p13)
}
  0x18   : > { %s1380_s16 = scalar_lea.vmem %s201_s29, 512  ;;  %p1388_p6 = scmp.lt.s32.totalorder %s201_s29, %s201_s29 }
  0x19   : > { %p1381_p0 = scmp.ne.s32.totalorder %s201_s29, %s1380_s16  ;;  %p1389_p1 = scmp.lt.s32.totalorder %s1380_s16, %s1380_s16 }
  0x1b   : > { %p1383_p2 = pnand %p1381_p0, %p1369_p9  ;;  %p1390_p4 = por %p1389_p1, %p1388_p6 }
  0x1d   : > { %p1384_p3 = pneg %p1383_p2 }
  0x1f   : > { %p1391_p5 = pnand %p1390_p4, %p1384_p3 }
  0x21   : > { %1394 = shalt.err (!%p1391_p5)
}
  0x22   : > { %s1495_s17 = smov 128   ;;  %s1496_s18 = smov 8  }
  0x23   : > { %1313 = dma.hbm_to_vmem [thread:$0]  (!%p1577_p7), %s1891_s1, 512, %s201_s29, [#allocation5], %s1495_s17, %s1495_s17, %s1496_s18  }
  0x24   : > { %s1395_s7 = scalar_lea.hbm %s1893_s3, 512 }
  0x25   : > { %p1396_p1 = scmp.ne.s32.totalorder %s1893_s3, %s1395_s7  ;;  %p1402_p8 = scmp.lt.u32.totalorder %s1395_s7, %s1893_s3 }
  0x27   : > { %p1398_p4 = pnand %p1396_p1, %p1369_p9 }
  0x29   : > { %p1399_p5 = pneg %p1398_p4 }
  0x2b   : > { %p1404_p10 = pnand %p1402_p8, %p1399_p5 }
  0x2d   : > { %1407 = shalt.err (!%p1404_p10)
}
  0x2e   : > { %s1408_s29 = scalar_lea.vmem %s1581_s8, 512  ;;  %p1416_p0 = scmp.lt.s32.totalorder %s1581_s8, %s1581_s8 }
  0x2f   : > { %p1409_p11 = scmp.ne.s32.totalorder %s1581_s8, %s1408_s29  ;;  %p1417_p2 = scmp.lt.s32.totalorder %s1408_s29, %s1408_s29 }
  0x31   : > { %p1411_p12 = pnand %p1409_p11, %p1369_p9  ;;  %p1418_p3 = por %p1417_p2, %p1416_p0 }
  0x33   : > { %p1412_p13 = pneg %p1411_p12 }
  0x35   : > { %p1419_p6 = pnand %p1418_p3, %p1412_p13 }
  0x37   : > { %1422 = shalt.err (!%p1419_p6)
}
  0x38   : > { %1316 = dma.hbm_to_vmem [thread:$0]  (!%p1577_p7), %s1893_s3, 512, %s1581_s8, [#allocation5], %s1495_s17, %s1495_s17, %s1496_s18  }
  0x39   : > { %s1637_s15 = sadd.s32 1, %s1491_s24   ;;  %s28_s30 = sadd.s32 1, %s1487_s23 }
  0x3a   : > { %s25_s16 = ssub.s32 %s1491_s24, %s1637_s15  ;;  %p35_p9 = scmp.ne.s32.totalorder %s1487_s23, %s1483_s22 }
  0x3b   : > { %p26_p1 = scmp.eq.s32.totalorder %s25_s16, 0  ;;  %p36_p4 = scmp.eq.s32.totalorder %s1491_s24, 0 }
  0x3c   : > { %p1323_p5 = scmp.lt.s32.totalorder %s1491_s24, 2  ;;  %s233_s19 = sand.u32 1, %s1487_s23  }
  0x3d   : > { %s1648_s20 = scalar_select %p26_p1, %s1487_s23, %s28_s30  }
  0x3e   : > { %p37_p8 = por %p36_p4, %p35_p9  ;;  %s1220_s21 = sshll.u32 %s233_s19, 4 }
  0x3f   : > { %s1247_s28 = sshll.u32 %s1491_s24, 8  ;;  %s237_s8 = scalar_lea.vmem [#allocation2], %s1220_s21 }
  0x40   : > { %s1654_s10 = scalar_lea.hbm %s1890_s0, %s1247_s28  ;;  %s244_s11 = sshll.u32 %s237_s8, 4  ;;  %s1660_s11 = int_to_ptr.vmem [resolvable:$true] %s244_s11 }
  0x41   : > { %p1656_p7 = pnand %p1323_p5, %p37_p8  ;;  %s1662_s24 = scalar_lea.sflag [#allocation3], %s233_s19 }
  0x42   : > { %s1423_s29 = scalar_lea.hbm %s1654_s10, 256  ;;  %s1428_s30 = scalar_lea.hbm %s1890_s0, 512 }
  0x43   : > { %p1424_p10 = scmp.ne.s32.totalorder %s1654_s10, %s1423_s29  ;;  %p1425_p11 = pneg %p1656_p7 }
  0x44   : > { %p1429_p0 = scmp.lt.u32.totalorder %s1654_s10, %s1890_s0  ;;  %p1430_p2 = scmp.lt.u32.totalorder %s1428_s30, %s1423_s29 }
  0x45   : > { %p1426_p12 = pnand %p1425_p11, %p1424_p10  ;;  %p1432_p6 = scmp.lt.u32.totalorder %s1423_s29, %s1654_s10 }
  0x46   : > { %p1431_p3 = por %p1430_p2, %p1429_p0 }
  0x47   : > { %p1427_p13 = pneg %p1426_p12 }
  0x48   : > { %p1433_p9 = por %p1432_p6, %p1431_p3 }
  0x4a   : > { %p1434_p1 = pnand %p1433_p9, %p1427_p13 }
  0x4c   : > { %1437 = shalt.err (!%p1434_p1)
}
  0x4d   : > { %s1438_s19 = scalar_lea.vmem %s1660_s11, 256  ;;  %s1497_s28 = smov [#allocation2]  }
  0x4e   : > { %p1439_p4 = scmp.ne.s32.totalorder %s1660_s11, %s1438_s19  ;;  %s1443_s7 = sshll.u32 %s1497_s28, 4  ;;  %s1444_s7 = int_to_ptr.vmem [resolvable:$false] %s1443_s7 }
  0x4f   : > { %s1445_s9 = scalar_lea.vmem %s1444_s7, 512  ;;  %p1446_p10 = scmp.lt.s32.totalorder %s1660_s11, %s1444_s7 }
  0x50   : > { %p1441_p5 = pnand %p1439_p4, %p1425_p11  ;;  %p1447_p12 = scmp.lt.s32.totalorder %s1445_s9, %s1438_s19 }
  0x52   : > { %p1442_p8 = pneg %p1441_p5  ;;  %p1448_p0 = por %p1447_p12, %p1446_p10 }
  0x54   : > { %p1449_p2 = pnand %p1448_p0, %p1442_p8 }
  0x56   : > { %1452 = shalt.err (!%p1449_p2)
}
  0x57   : > { %1320 = dma.hbm_to_vmem [thread:$0]  (!%p1656_p7), %s1654_s10, 256, %s1660_s11, %s1662_s24, %s1495_s17, %s1495_s17, %s1496_s18  }
  0x58   : > { %p1904_p11 = scmp.ne.s32.totalorder %s1901_s27, 0 }
  0x59   : > { %s258_s8 = sand.u32 (!%p1904_p11), 1, %s1483_s22   ;;  %p1905_p13 = scmp.ne.s32.totalorder (!%p1904_p11), %s1900_s26, 0 }
  0x5a   : > { %256 = sbr.rel (%p1904_p11) target bundleno = 494 (0x1ee), region = 40  ;;  %s1696_s29 = sshll.u32 (!%p1904_p11), %s258_s8, 4 }
  0x5b   : > { %s259_s13 = scalar_lea.sflag (!%p1904_p11), [#allocation3], %s258_s8  ;;  %s262_s14 = scalar_lea.vmem (!%p1904_p11), [#allocation2], %s1696_s29 }
  0x61   : > { %1470 = dma.done.wait (%p1905_p13), %s259_s13, 256  }
  0x62   : > { %1472 = vsyncadd (%p1905_p13), %s259_s13, 4294967040  ;;  %p1906_p3 = scmp.eq.s32.totalorder %s1557_s25, 0 }
  0x64   : > { %1474 = dma.done.wait (%p1906_p3), [#allocation5], 1024   ;;  %p1907_p7 = pmov %p1906_p3 }
  0x65   : > { %vm327_vm0 = vcmask 261120   ;;  %v316_v0 = vld [vmem:[#allocation4] sm:$0xff]  ;;  %v317_v1 = vld [vmem:[#allocation4 + $0x8] sm:$0xff]  ;;  %v318_v2 = vld [vmem:[#allocation4 + $0x10] sm:$0xff]  ;;  %s1498_s17 = smov 112   ;;  %s1499_s18 = smov 120   ;;  %v520_v26 = vlaneseq }
  0x66   : > { %1476 = vsyncadd (%p1907_p7), [#allocation5], 4294966272  ;;  %v1284_v3 = vpack.c.bf16 %v317_v1, %v316_v0  ;;  %v319_v4 = vld [vmem:[#allocation4 + $0x18] sm:$0xff]  ;;  %v314_v5 = vld [vmem:[%s262_s14] sm:$0xff]  ;;  %s1500_s12 = smov 104   ;;  %p304_p6 = scmp.lt.s32.totalorder %s1557_s25, 1 }
  0x67   : > { %v409_v6 = vld [vmem:[#allocation6] sm:$0xff]  ;;  %v1288_v7 = vpack.c.bf16 %v319_v4, %v318_v2  ;;  %1270 = vmatprep.mubr.msk.f32.mxu0 %vm327_vm0, %v314_v5  ;;  %v410_v8 = vld [vmem:[#allocation6 + $0x8] sm:$0xff]  ;;  %v411_v9 = vld [vmem:[#allocation6 + $0x10] sm:$0xff]  ;;  %1281 = vmatprep.mubr.msk.f32.mxu1 %vm327_vm0, %v314_v5  ;;  %v1501_v24 = vmov 1983009808   ;;  %v521_v30 = vshrl.u32 %v520_v26, 7 }
  0x68   : > { %1285 = vmatprep.subr.bf16.mxu0 %v1284_v3  ;;  %v1292_v10 = vpack.c.bf16 %v410_v8, %v409_v6  ;;  %v412_v11 = vld [vmem:[#allocation6 + $0x18] sm:$0xff]  ;;  %v1231_v14 = vld [vmem:[%s1892_s2] ss:$0 sm:$0xff]  ;;  %v518_v25 = vunpack.c.l.s4 %v1501_v24  ;;  %v1502_v27 = vmov 1934713408   ;;  %s1913_s25 = smov (!%p304_p6, %s1557_s25), 1 }
  0x69   : > { %1287 = vmatpush3.bf16.msra.mxu0 %v1284_v3  ;;  %v1296_v12 = vpack.c.bf16 %v412_v11, %v411_v9  ;;  %v315_v13 = vld [vmem:[%s262_s14 + $0x8] sm:$0xff]  ;;  %v1234_v20 = vld [vmem:[%s1894_s4] ss:$0 sm:$0xff]  ;;  %v550_v28 = vunpack.c.l.s4 %v1502_v27  ;;  %vm787_vm1 = vcmask 64512   ;;  %s1248_s24 = sshll.u32 %s1913_s25, 6 }
  0x6a   : > { %1289 = vmatprep.subr.bf16.mxu0 %v1288_v7  ;;  %1293 = vmatprep.subr.bf16.mxu1 %v1292_v10  ;;  %v519_v29 = vunpack.c.0.s8 %v518_v25  ;;  %s1778_s21 = scalar_lea.vmem %s1895_s5, %s1248_s24  ;;  %s1847_s7 = scalar_lea.vmem %s1896_s6, %s1248_s24 }
  0x6b   : > { %1295 = vmatpush3.bf16.msra.mxu1 %v1292_v10  ;;  %v551_v33 = vunpack.c.0.s8 %v550_v28 }
  0x6c   : > { %1297 = vmatprep.subr.bf16.mxu1 %v1296_v12  ;;  %v1732_v34 = vsub.s32 %v519_v29, %v521_v30 }
  0x6d   : > { %1291 = vmatpush3.bf16.msra.mxu0 %v1288_v7  ;;  %v1734_v41 = vsub.s32 %v551_v33, %v521_v30 }
  0x6f   : > { %1299 = vmatpush3.bf16.msra.mxu1 %v1296_v12 }
  0x70   : > { %1271 = vmatmul.mubr.msk.f32.vlgmr.msra.gmra.mrb[0].mxu0 %vm327_vm0, %v315_v13 }
  0x72   : > { %1282 = vmatmul.mubr.msk.f32.vlgmr.msra.gmra.mrb[0].mxu1 %vm327_vm0, %v315_v13 }
 0x143   : > { %v1272_v15 = vpop.f32.mrb[0].mxu0 }
 0x144   : > { %v406_v16 = vadd.f32 %v1272_v15, %v1231_v14  ;;  %v400_v17 = vpop.f32.mrb[1].mxu0 }
 0x145   : > { %v1283_v18 = vpop.f32.mrb[0].mxu1  ;;  %v1717_v21 = vadd.f32 %v1231_v14, %v400_v17 }
 0x146   : > { %505 = vrot.lane.b32.xlu1 %v406_v16, %s1498_s17  ;;  %499 = vrot.lane.b32.xlu0 %v406_v16, %s1499_s18  ;;  %v486_v19 = vpop.f32.mrb[1].mxu1  ;;  %v1719_v22 = vadd.f32 %v1283_v18, %v1234_v20 }
 0x147   : > { %v1724_v23 = vadd.f32 %v1234_v20, %v486_v19 }
 0x14a   : > { %511 = vrot.lane.b32.xlu1 %v406_v16, %s1500_s12  ;;  %497 = vrot.lane.b32.xlu0 %v1717_v21, %s1499_s18 }
 0x14e   : > { %800 = vrot.lane.b32.xlu1 %v1719_v22, %s1499_s18  ;;  %509 = vrot.lane.b32.xlu0 %v1717_v21, %s1500_s12 }
 0x152   : > { %806 = vrot.lane.b32.xlu1 %v1719_v22, %s1498_s17  ;;  %798 = vrot.lane.b32.xlu0 %v1724_v23, %s1499_s18 }
 0x156   : > { %503 = vrot.lane.b32.xlu1 %v1717_v21, %s1498_s17  ;;  %804 = vrot.lane.b32.xlu0 %v1724_v23, %s1498_s17 }
 0x15a   : > { %812 = vrot.lane.b32.xlu1 %v1719_v22, %s1500_s12  ;;  %810 = vrot.lane.b32.xlu0 %v1724_v23, %s1500_s12 }
 0x1b8   : > { %v506_v31 = vpop.permute.xlu1 %505  ;;  %v500_v32 = vpop.permute.xlu0 %499 }
 0x1b9   : > { %v583_v35 = vcombine.low %v406_v16, %v506_v31  ;;  %v584_v36 = vcombine.high %v406_v16, %v506_v31 }
 0x1bb   : > { %v591_v42 = vrot.slane %v583_v35, %v1732_v34  ;;  %v598_v43 = vrot.slane %v584_v36, %v1732_v34 }
 0x1bc   : > { %v512_v37 = vpop.permute.xlu1 %511  ;;  %v498_v38 = vpop.permute.xlu0 %497 }
 0x1bd   : > { %v599_v39 = vcombine.low %v500_v32, %v512_v37  ;;  %v600_v40 = vcombine.high %v500_v32, %v512_v37 }
 0x1bf   : > { %v607_v44 = vrot.slane %v599_v39, %v1732_v34  ;;  %v614_v45 = vrot.slane %v600_v40, %v1732_v34 }
 0x1c0   : > { %v1740_v46 = vpop.permute.xlu1 %800  ;;  %v510_v47 = vpop.permute.xlu0 %509 }
 0x1c1   : > { %v615_v48 = vcombine.low %v591_v42, %v607_v44  ;;  %v616_v49 = vcombine.high %v591_v42, %v607_v44  ;;  %v631_v50 = vcombine.low %v598_v43, %v614_v45  ;;  %v632_v51 = vcombine.high %v598_v43, %v614_v45 }
 0x1c2   : > { %v531_v56 = vcombine.low %v498_v38, %v510_v47  ;;  %v532_v57 = vcombine.high %v498_v38, %v510_v47 }
 0x1c3   : > { %v623_v52 = vrot.slane %v615_v48, %v1734_v41  ;;  %v630_v53 = vrot.slane %v616_v49, %v1734_v41  ;;  %v639_v54 = vrot.slane %v631_v50, %v1734_v41  ;;  %v646_v55 = vrot.slane %v632_v51, %v1734_v41 }
 0x1c4   : > { %v807_v58 = vpop.permute.xlu1 %806  ;;  %v1747_v59 = vpop.permute.xlu0 %798  ;;  %v539_v6 = vrot.slane %v531_v56, %v1732_v34  ;;  %v546_v7 = vrot.slane %v532_v57, %v1732_v34 }
 0x1c5   : > { %v719_v60 = vcombine.low %v623_v52, %v630_v53  ;;  %v1239_v61 = vcombine.high %v623_v52, %v630_v53  ;;  %v735_v62 = vcombine.low %v639_v54, %v646_v55  ;;  %v1240_v63 = vcombine.high %v639_v54, %v646_v55 }
 0x1c6   : > { %v884_v0 = vcombine.low %v1719_v22, %v807_v58  ;;  %v885_v1 = vcombine.high %v1719_v22, %v807_v58 }
 0x1c7   : > { %v726_v2 = vrot.slane %v719_v60, %v1732_v34  ;;  %v734_v3 = vrot.slane %v1239_v61, %v1732_v34  ;;  %v742_v4 = vrot.slane %v735_v62, %v1732_v34  ;;  %v750_v5 = vrot.slane %v1240_v63, %v1732_v34 }
 0x1c8   : > { %v892_v8 = vrot.slane %v884_v0, %v1732_v34  ;;  %v1762_v9 = vrot.slane %v885_v1, %v1732_v34  ;;  %v504_v10 = vpop.permute.xlu1 %503  ;;  %v805_v11 = vpop.permute.xlu0 %804 }
 0x1c9   : > { %v751_v12 = vcombine.low %v726_v2, %v734_v3  ;;  %v752_v13 = vcombine.high %v726_v2, %v734_v3  ;;  %v767_v14 = vcombine.low %v742_v4, %v750_v5  ;;  %v768_v15 = vcombine.high %v742_v4, %v750_v5 }
 0x1ca   : > { %v515_v16 = vcombine.low %v1717_v21, %v504_v10  ;;  %v516_v17 = vcombine.high %v1717_v21, %v504_v10  ;;  %v816_v18 = vcombine.low %v1724_v23, %v805_v11  ;;  %v817_v19 = vcombine.high %v1724_v23, %v805_v11 }
 0x1cb   : > { %v759_v20 = vrot.slane %v751_v12, %v1734_v41  ;;  %v766_v22 = vrot.slane %v752_v13, %v1734_v41  ;;  %v775_v24 = vrot.slane %v767_v14, %v1734_v41  ;;  %v782_v25 = vrot.slane %v768_v15, %v1734_v41 }
 0x1cc   : > { %v523_v21 = vrot.slane %v515_v16, %v1732_v34  ;;  %v530_v23 = vrot.slane %v516_v17, %v1732_v34  ;;  %v1783_v26 = vrot.slane %v816_v18, %v1732_v34  ;;  %v1786_v27 = vrot.slane %v817_v19, %v1732_v34  ;;  %v813_v28 = vpop.permute.xlu1 %812  ;;  %v811_v29 = vpop.permute.xlu0 %810 }
 0x1cd   : > { %v783_v30 = vcombine.low %v759_v20, %v775_v24  ;;  %v784_v31 = vcombine.high %v759_v20, %v775_v24  ;;  %v785_v32 = vcombine.low %v766_v22, %v782_v25  ;;  %v786_v33 = vcombine.high %v766_v22, %v782_v25 }
 0x1ce   : > { %v547_v35 = vcombine.low %v523_v21, %v539_v6  ;;  %v548_v36 = vcombine.high %v523_v21, %v539_v6  ;;  %v563_v37 = vcombine.low %v530_v23, %v546_v7  ;;  %v564_v38 = vcombine.high %v530_v23, %v546_v7 }
 0x1cf   : > { %789 = vst.msk [vmem:[%s1778_s21 + $0x8] sm:$0xff] %vm787_vm1, %v783_v30  ;;  %791 = vst.msk [vmem:[%s1778_s21 + $0x18] sm:$0xff] %vm787_vm1, %v784_v31  ;;  %v900_v39 = vcombine.low %v1740_v46, %v813_v28  ;;  %v901_v40 = vcombine.high %v1740_v46, %v813_v28  ;;  %v832_v42 = vcombine.low %v1747_v59, %v811_v29 }
 0x1d0   : > { %793 = vst.msk [vmem:[%s1778_s21 + $0x28] sm:$0xff] %vm787_vm1, %v785_v32  ;;  %795 = vst.msk [vmem:[%s1778_s21 + $0x38] sm:$0xff] %vm787_vm1, %v786_v33  ;;  %v833_v43 = vcombine.high %v1747_v59, %v811_v29  ;;  %v555_v44 = vrot.slane %v547_v35, %v1734_v41  ;;  %v562_v45 = vrot.slane %v548_v36, %v1734_v41 }
 0x1d1   : > { %v571_v47 = vrot.slane %v563_v37, %v1734_v41  ;;  %v578_v48 = vrot.slane %v564_v38, %v1734_v41  ;;  %v908_v49 = vrot.slane %v900_v39, %v1732_v34  ;;  %v915_v50 = vrot.slane %v901_v40, %v1732_v34 }
 0x1d2   : > { %v840_v51 = vrot.slane %v832_v42, %v1732_v34  ;;  %v847_v46 = vrot.slane %v833_v43, %v1732_v34  ;;  %v651_v52 = vcombine.low %v555_v44, %v562_v45  ;;  %v1237_v53 = vcombine.high %v555_v44, %v562_v45 }
 0x1d3   : > { %v667_v54 = vcombine.low %v571_v47, %v578_v48  ;;  %v1238_v55 = vcombine.high %v571_v47, %v578_v48  ;;  %v916_v56 = vcombine.low %v892_v8, %v908_v49  ;;  %v917_v57 = vcombine.high %v892_v8, %v908_v49 }
 0x1d4   : > { %v932_v58 = vcombine.low %v1762_v9, %v915_v50  ;;  %v933_v59 = vcombine.high %v1762_v9, %v915_v50  ;;  %v658_v60 = vrot.slane %v651_v52, %v1732_v34  ;;  %v666_v61 = vrot.slane %v1237_v53, %v1732_v34 }
 0x1d5   : > { %v674_v62 = vrot.slane %v667_v54, %v1732_v34  ;;  %v682_v63 = vrot.slane %v1238_v55, %v1732_v34  ;;  %v924_v0 = vrot.slane %v916_v56, %v1734_v41  ;;  %v931_v1 = vrot.slane %v917_v57, %v1734_v41 }
 0x1d6   : > { %v940_v2 = vrot.slane %v932_v58, %v1734_v41  ;;  %v947_v3 = vrot.slane %v933_v59, %v1734_v41  ;;  %v683_v4 = vcombine.low %v658_v60, %v666_v61  ;;  %v684_v5 = vcombine.high %v658_v60, %v666_v61 }
 0x1d7   : > { %v699_v6 = vcombine.low %v674_v62, %v682_v63  ;;  %v700_v7 = vcombine.high %v674_v62, %v682_v63  ;;  %v1020_v8 = vcombine.low %v924_v0, %v931_v1  ;;  %v1243_v9 = vcombine.high %v924_v0, %v931_v1 }
 0x1d8   : > { %v1036_v10 = vcombine.low %v940_v2, %v947_v3  ;;  %v1244_v11 = vcombine.high %v940_v2, %v947_v3  ;;  %v691_v12 = vrot.slane %v683_v4, %v1734_v41  ;;  %v698_v13 = vrot.slane %v684_v5, %v1734_v41 }
 0x1d9   : > { %v707_v14 = vrot.slane %v699_v6, %v1734_v41  ;;  %v714_v15 = vrot.slane %v700_v7, %v1734_v41  ;;  %v1027_v16 = vrot.slane %v1020_v8, %v1732_v34  ;;  %v1035_v17 = vrot.slane %v1243_v9, %v1732_v34 }
 0x1da   : > { %v1043_v18 = vrot.slane %v1036_v10, %v1732_v34  ;;  %v1051_v19 = vrot.slane %v1244_v11, %v1732_v34  ;;  %v848_v30 = vcombine.low %v1783_v26, %v840_v51  ;;  %v849_v31 = vcombine.high %v1783_v26, %v840_v51 }
 0x1db   : > { %v715_v20 = vcombine.low %v691_v12, %v707_v14  ;;  %v716_v22 = vcombine.high %v691_v12, %v707_v14  ;;  %v717_v24 = vcombine.low %v698_v13, %v714_v15  ;;  %v718_v25 = vcombine.high %v698_v13, %v714_v15 }
 0x1dc   : > { %v1052_v21 = vcombine.low %v1027_v16, %v1035_v17  ;;  %v1053_v23 = vcombine.high %v1027_v16, %v1035_v17  ;;  %v1068_v28 = vcombine.low %v1043_v18, %v1051_v19  ;;  %v1069_v29 = vcombine.high %v1043_v18, %v1051_v19 }
 0x1dd   : > { %788 = vst.msk [vmem:[%s1778_s21] sm:$0xff] %vm787_vm1, %v715_v20  ;;  %790 = vst.msk [vmem:[%s1778_s21 + $0x10] sm:$0xff] %vm787_vm1, %v716_v22  ;;  %v864_v32 = vcombine.low %v1786_v27, %v847_v46  ;;  %v865_v33 = vcombine.high %v1786_v27, %v847_v46  ;;  %v856_v26 = vrot.slane %v848_v30, %v1734_v41 }
 0x1de   : > { %792 = vst.msk [vmem:[%s1778_s21 + $0x20] sm:$0xff] %vm787_vm1, %v717_v24  ;;  %794 = vst.msk [vmem:[%s1778_s21 + $0x30] sm:$0xff] %vm787_vm1, %v718_v25  ;;  %v1060_v35 = vrot.slane %v1052_v21, %v1734_v41  ;;  %v1067_v36 = vrot.slane %v1053_v23, %v1734_v41  ;;  %v1076_v37 = vrot.slane %v1068_v28, %v1734_v41 }
 0x1df   : > { %v1083_v38 = vrot.slane %v1069_v29, %v1734_v41  ;;  %v863_v27 = vrot.slane %v849_v31, %v1734_v41  ;;  %v872_v39 = vrot.slane %v864_v32, %v1734_v41  ;;  %v879_v40 = vrot.slane %v865_v33, %v1734_v41 }
 0x1e0   : > { %v1084_v42 = vcombine.low %v1060_v35, %v1076_v37  ;;  %v1085_v43 = vcombine.high %v1060_v35, %v1076_v37 }
 0x1e1   : > { %v1086_v44 = vcombine.low %v1067_v36, %v1083_v38  ;;  %v1087_v45 = vcombine.high %v1067_v36, %v1083_v38  ;;  %v952_v47 = vcombine.low %v856_v26, %v863_v27  ;;  %v1241_v48 = vcombine.high %v856_v26, %v863_v27 }
 0x1e2   : > { %v968_v49 = vcombine.low %v872_v39, %v879_v40  ;;  %v1242_v50 = vcombine.high %v872_v39, %v879_v40  ;;  %1089 = vst.msk [vmem:[%s1847_s7 + $0x8] sm:$0xff] %vm787_vm1, %v1084_v42  ;;  %1091 = vst.msk [vmem:[%s1847_s7 + $0x18] sm:$0xff] %vm787_vm1, %v1085_v43 }
 0x1e3   : > { %1093 = vst.msk [vmem:[%s1847_s7 + $0x28] sm:$0xff] %vm787_vm1, %v1086_v44  ;;  %1095 = vst.msk [vmem:[%s1847_s7 + $0x38] sm:$0xff] %vm787_vm1, %v1087_v45  ;;  %v959_v51 = vrot.slane %v952_v47, %v1732_v34  ;;  %v967_v46 = vrot.slane %v1241_v48, %v1732_v34 }
 0x1e4   : > { %v975_v52 = vrot.slane %v968_v49, %v1732_v34  ;;  %v983_v53 = vrot.slane %v1242_v50, %v1732_v34 }
 0x1e5   : > { %v984_v54 = vcombine.low %v959_v51, %v967_v46  ;;  %v985_v55 = vcombine.high %v959_v51, %v967_v46 }
 0x1e6   : > { %v1000_v56 = vcombine.low %v975_v52, %v983_v53  ;;  %v1001_v57 = vcombine.high %v975_v52, %v983_v53 }
 0x1e7   : > { %v992_v58 = vrot.slane %v984_v54, %v1734_v41  ;;  %v999_v59 = vrot.slane %v985_v55, %v1734_v41 }
 0x1e8   : > { %v1008_v60 = vrot.slane %v1000_v56, %v1734_v41  ;;  %v1015_v61 = vrot.slane %v1001_v57, %v1734_v41 }
 0x1ea   : > { %v1016_v62 = vcombine.low %v992_v58, %v1008_v60  ;;  %v1017_v63 = vcombine.high %v992_v58, %v1008_v60  ;;  %v1018_v0 = vcombine.low %v999_v59, %v1015_v61  ;;  %v1019_v1 = vcombine.high %v999_v59, %v1015_v61 }
 0x1ec   : > { %1088 = vst.msk [vmem:[%s1847_s7] sm:$0xff] %vm787_vm1, %v1016_v62  ;;  %1090 = vst.msk [vmem:[%s1847_s7 + $0x10] sm:$0xff] %vm787_vm1, %v1017_v63 }
 0x1ed   : > { %1092 = vst.msk [vmem:[%s1847_s7 + $0x20] sm:$0xff] %vm787_vm1, %v1018_v0  ;;  %1094 = vst.msk [vmem:[%s1847_s7 + $0x30] sm:$0xff] %vm787_vm1, %v1019_v1 }
 0x1ee PF: > { %p18_p9 = scmp.ge.s32.totalorder %s1637_s15, 4   ;;  %s1908_s21 = smov %s1483_s22 }
 0x1ef   : > { %s1909_s22 = smov %s1487_s23  ;;  %s1910_s23 = smov %s1648_s20 }
 0x1f0   : > { %s1911_s24 = smov %s1637_s15  ;;  %20 = sbr.rel (!%p18_p9) target bundleno = 4 (0x4), region = 100 }
 0x1f7   :  { %1133 = vsyncpa [#allocation3], 1 }
 0x1f8   :  { %1135 = vsyncpa [#allocation3 + $0x1], 1 }
 0x1f9   :  { %1136 = vsyncpa [#allocation5], 1 }

</bundles_post_ra>
